<compile_context>
chip_gen: v7x
topology: tpu7x:2x2x1
jax: 0.10.0
libtpu: 0.0.40
codegen_flags: <defaults>
</compile_context>

<pallas_src>
import functools

import jax
import jax.numpy as jnp
import numpy as np
from jax.experimental import pallas as pl
from jax.experimental.pallas import tpu as pltpu


# --------------------------------------------------------------------------
# Kernel
# --------------------------------------------------------------------------
def _spectral_conv1d_kernel(x_ref, f2_ref, wp_ref, wq_ref, g2_ref, o_ref,
                            yf_ref, *, kp, tci, mix_dtype):
    """Grid = (batch blocks, Cin blocks); Cin is the inner reduction axis.

    x_ref  : (TCI, TB, N)        input rows, channel-major (compute dtype)
    f2_ref : (N, 2*KP)           fused forward DFT columns [cos | -sin]
    wp_ref : (TCI, Cout, 2*KP)   fused weights  [wr | wr]
    wq_ref : (TCI, Cout, 2*KP)   fused weights  [-wi | wi]
    g2_ref : (2*KP, N)           fused inverse DFT rows [Gc ; Gs]
    o_ref  : (TB, Cout, N)       output (f32), resident across the Cin axis
    yf_ref : (TB, Cout, 2*KP)    f32 spectral accumulator (VMEM scratch)
    """
    ic = pl.program_id(1)

    @pl.when(ic == 0)
    def _init():
        yf_ref[...] = jnp.zeros_like(yf_ref)

    # Forward rfft (first K modes, zero-padded to KP) as ONE batch-folded MXU
    # matmul: M = TCI*TB rows.  Columns [0:KP]=real, [KP:2KP]=imag.
    x = x_ref[...]                                               # (TCI, TB, N)
    tci_, tb, n = x.shape
    xf = jnp.dot(x.reshape(tci_ * tb, n), f2_ref[...],
                 preferred_element_type=jnp.float32)             # (TCI*TB, 2KP)
    xf = xf.reshape(tci_, tb, 2 * kp)                            # [xr | xi]

    # Per-mode complex channel mix, streamed over the TCI channels of this
    # block (short bounded unroll; the rest of the Cin reduction is on the
    # grid axis).  Per channel:
    #   [xr|xi]*[wr|wr] + [xi|xr]*[-wi|wi] = [yr | yi]
    acc = yf_ref[...]                                            # (TB, Cout, 2KP) f32
    for j in range(tci):
        xr_xi = xf[j]                                            # (TB, 2KP)
        xi_xr = pltpu.roll(xr_xi, kp, axis=1)                    # lane half-swap (XLU)
        a = xr_xi.astype(mix_dtype)[:, None, :] * wp_ref[j][None, :, :]
        b = xi_xr.astype(mix_dtype)[:, None, :] * wq_ref[j][None, :, :]
        acc = acc + (a + b).astype(jnp.float32)
    yf_ref[...] = acc

    # Last Cin block: inverse rfft as ONE wide MXU matmul (M = TB*Cout).
    @pl.when(ic == pl.num_programs(1) - 1)
    def _finish():
        yf = yf_ref[...]
        tb_, cout, two_kp = yf.shape
        y = jnp.dot(yf.reshape(tb_ * cout, two_kp).astype(g2_ref.dtype),
                    g2_ref[...], preferred_element_type=jnp.float32)
        o_ref[...] = y.reshape(tb_, cout, -1).astype(o_ref.dtype)


# --------------------------------------------------------------------------
# Host-side helpers
# --------------------------------------------------------------------------
@functools.lru_cache(maxsize=None)
def _dft_matrices_np(N, K, KP):
    """Fused, zero-padded forward/inverse real-DFT matrices (host, cached)."""
    n = np.arange(N, dtype=np.float64)[:, None]
    k = np.arange(K, dtype=np.float64)[None, :]
    ang = 2.0 * np.pi * n * k / N
    Fc = np.zeros((N, KP)); Fc[:, :K] = np.cos(ang)
    Fs = np.zeros((N, KP)); Fs[:, :K] = -np.sin(ang)
    F2 = np.concatenate([Fc, Fs], axis=1)                        # (N, 2KP)

    kk = np.arange(K)
    edge = (kk == 0) | ((N % 2 == 0) & (kk == N // 2))
    ck = np.where(edge, 1.0, 2.0)                                # DC / Nyquist
    ang2 = 2.0 * np.pi * np.arange(K, dtype=np.float64)[:, None] * \
        np.arange(N, dtype=np.float64)[None, :] / N
    Gc = np.zeros((KP, N)); Gc[:K] = (ck[:, None] / N) * np.cos(ang2)
    Gs = np.zeros((KP, N)); Gs[:K] = -(ck[:, None] / N) * np.sin(ang2)
    G2 = np.concatenate([Gc, Gs], axis=0)                        # (2KP, N)
    return F2, G2


def _vmem_capacity_bytes():
    try:
        return int(pltpu.get_tpu_info().vmem_capacity_bytes)
    except Exception:
        return 64 * 1024 * 1024        # conservative: v7x per-TensorCore VMEM


def _largest_divisor_leq(n, cap):
    for d in range(min(n, cap), 0, -1):
        if n % d == 0:
            return d
    return 1


def _resident_spec(block_shape, index_map):
    """Single-buffer a grid-invariant operand; graceful fallback."""
    buffered = getattr(pl, "Buffered", None)
    if buffered is None:
        return pl.BlockSpec(block_shape, index_map)
    try:
        return pl.BlockSpec(block_shape, index_map, pipeline_mode=buffered(1))
    except TypeError:
        return pl.BlockSpec(block_shape, index_map)


def _vmem_estimate(tb, tci, cout, n, kp, cdt_size, mix_size):
    two_kp = 2 * kp
    b = 2 * tci * tb * n * cdt_size               # x block (double-buffered)
    b += 2 * tb * cout * n * 4                    # out block (double-buffered)
    b += 2 * 2 * tci * cout * two_kp * mix_size   # WP+WQ blocks (double-buffered)
    b += 2 * 2 * n * two_kp * cdt_size            # F2+G2 (count 2 bufs to be safe)
    b += 2 * tb * cout * two_kp * 4               # yf scratch + mix temporaries
    b += 4 * tci * tb * two_kp * 4                # xf, per-channel roll/cast temps
    return b


def _pick_tb(B, tci, cout, n, kp, cdt_size, mix_size, budget):
    cands = sorted({d for d in range(1, B + 1)
                    if B % d == 0 and (d == B or d % 8 == 0)}, reverse=True)
    est = lambda tb: _vmem_estimate(tb, tci, cout, n, kp, cdt_size, mix_size)
    fitting = [tb for tb in cands if tb * tci <= 1024 and est(tb) <= budget]
    if fitting:
        # Prefer >=2 batch blocks (v7x megacore) while keeping MXU M filled.
        multi = [tb for tb in fitting if B // tb >= 2 and tb * tci >= 128]
        tb = multi[0] if multi else fitting[0]
    else:
        tb = cands[-1]
    return tb, est(tb)


# --------------------------------------------------------------------------
# Wrapper
# --------------------------------------------------------------------------
@functools.partial(jax.jit, static_argnames=("modes", "compute_dtype",
                                             "mix_dtype"))
def spectral_conv1d(x, w_real, w_imag, modes,
                    compute_dtype=jnp.bfloat16, mix_dtype=jnp.float32):
    """Pallas implementation of SpectralConv1d.forward.

    x       : (B, Cin, N) float32
    w_real  : (Cin, Cout, modes) float32
    w_imag  : (Cin, Cout, modes) float32
    returns : (B, Cout, N) float32

    compute_dtype: dtype of the two DFT matmuls (MXU), f32 accumulation.
    mix_dtype    : dtype of the channel-mix multiplies (f32 accumulation);
                   keep f32 on v5e (no bf16 VALU), bf16 pays on v6e/v7x.
    """
    B, Cin, N = x.shape
    Cout = w_real.shape[1]
    K = modes
    assert K <= N // 2 + 1

    # 2*KP must be a multiple of 128 lanes; for large mode counts pad to a
    # multiple of 256 to fill the 256-wide v6e/v7x MXU.
    pad = 128 if K >= 96 else 64
    KP = ((K + pad - 1) // pad) * pad
    two_kp = 2 * KP

    F2_np, G2_np = _dft_matrices_np(N, K, KP)
    F2 = jnp.asarray(F2_np, dtype=compute_dtype)
    G2 = jnp.asarray(G2_np, dtype=compute_dtype)

    # Fused, zero-padded spectral weights: [wr|wr] and [-wi|wi].
    wr = jnp.zeros((Cin, Cout, KP), mix_dtype).at[:, :, :K].set(
        w_real.astype(mix_dtype))
    wi = jnp.zeros((Cin, Cout, KP), mix_dtype).at[:, :, :K].set(
        w_imag.astype(mix_dtype))
    WP = jnp.concatenate([wr, wr], axis=-1)                      # (Cin,Cout,2KP)
    WQ = jnp.concatenate([-wi, wi], axis=-1)                     # (Cin,Cout,2KP)

    cdt_size = jnp.dtype(compute_dtype).itemsize
    mix_size = jnp.dtype(mix_dtype).itemsize

    TCI = _largest_divisor_leq(Cin, 8)            # bounded in-kernel unroll
    vmem_cap = _vmem_capacity_bytes()
    TB, est_bytes = _pick_tb(B, TCI, Cout, N, KP, cdt_size, mix_size,
                             budget=int(0.7 * vmem_cap))
    vmem_limit = int(max(32 * 1024 * 1024,
                         min(2 * est_bytes, int(0.9 * vmem_cap))))

    grid = (B // TB, Cin // TCI)

    # Channel-major input so the Cin grid axis is a clean leading block dim
    # (layout plumbing done by XLA outside the kernel).
    x_t = jnp.transpose(x, (1, 0, 2)).astype(compute_dtype)      # (Cin, B, N)

    cost = pl.CostEstimate(
        flops=int(2 * B * Cin * N * two_kp          # forward DFT
                  + 2 * B * Cout * two_kp * N       # inverse DFT
                  + 4 * B * Cin * Cout * two_kp),   # channel mix
        transcendentals=0,
        bytes_accessed=int(B * Cin * N * cdt_size + B * Cout * N * 4
                           + 2 * N * two_kp * cdt_size
                           + 2 * Cin * Cout * two_kp * mix_size))

    kernel = functools.partial(_spectral_conv1d_kernel,
                               kp=KP, tci=TCI, mix_dtype=mix_dtype)
    out = pl.pallas_call(
        kernel,
        out_shape=jax.ShapeDtypeStruct((B, Cout, N), jnp.float32),
        grid=grid,
        in_specs=[
            pl.BlockSpec((TCI, TB, N), lambda b, c: (c, b, 0)),           # x
            _resident_spec((N, two_kp), lambda b, c: (0, 0)),             # F2
            pl.BlockSpec((TCI, Cout, two_kp), lambda b, c: (c, 0, 0)),    # WP
            pl.BlockSpec((TCI, Cout, two_kp), lambda b, c: (c, 0, 0)),    # WQ
            _resident_spec((two_kp, N), lambda b, c: (0, 0)),             # G2
        ],
        out_specs=pl.BlockSpec((TB, Cout, N), lambda b, c: (b, 0, 0)),
        scratch_shapes=[pltpu.VMEM((TB, Cout, two_kp), jnp.float32)],
        compiler_params=pltpu.CompilerParams(
            dimension_semantics=("parallel", "arbitrary"),
            vmem_limit_bytes=vmem_limit),
        cost_estimate=cost,
    )(x_t, F2, WP, WQ, G2)
    return out


def spectral_conv1d_reference(x, w_real, w_imag, modes):
    """Pure-JAX reference mirroring the PyTorch forward."""
    w = w_real.astype(jnp.complex64) + 1j * w_imag.astype(jnp.complex64)
    x_ft = jnp.fft.rfft(x)
    B, _, N = x.shape
    Cout = w.shape[1]
    out_ft = jnp.zeros((B, Cout, N // 2 + 1), dtype=jnp.complex64)
    out_ft = out_ft.at[:, :, :modes].set(
        jnp.einsum('bix,iox->box', x_ft[:, :, :modes], w))
    return jnp.fft.irfft(out_ft, n=N)


if __name__ == "__main__":
    B, Cin, Cout, N, modes = 2, 4, 4, 16, 8

    key = jax.random.PRNGKey(0)
    kx, kwr, kwi = jax.random.split(key, 3)

    # Parameters: scale * rand(Cin, Cout, modes, cfloat) -> uniform [0, scale)
    scale = 1.0 / (Cin * Cout)
    w_real = scale * jax.random.uniform(kwr, (Cin, Cout, modes), dtype=jnp.float32)
    w_imag = scale * jax.random.uniform(kwi, (Cin, Cout, modes), dtype=jnp.float32)
    x = jax.random.normal(kx, (B, Cin, N), dtype=jnp.float32)

    ref = jax.block_until_ready(spectral_conv1d_reference(x, w_real, w_imag, modes))

    # Exact f32 path (tight tolerance).
    out_f32 = jax.block_until_ready(
        spectral_conv1d(x, w_real, w_imag, modes=modes,
                        compute_dtype=jnp.float32, mix_dtype=jnp.float32))
    np.testing.assert_allclose(np.asarray(out_f32), np.asarray(ref),
                               rtol=1e-3, atol=1e-3)

    # Production default (bf16 DFT matmuls, f32 mix/accumulation).
    out_def = jax.block_until_ready(
        spectral_conv1d(x, w_real, w_imag, modes=modes))
    np.testing.assert_allclose(np.asarray(out_def), np.asarray(ref),
                               rtol=5e-2, atol=6e-2)

    print("KERNEL_OK")
</pallas_src>

<mosaic_0001>
module attributes {stable_mosaic.version = 11 : i64} {
  func.func @_spectral_conv1d_kernel(%arg0: i32, %arg1: i32, %arg2: memref<4x2x16xf32, #tpu.memory_space<vmem>>, %arg3: memref<16x128xf32, #tpu.memory_space<vmem>>, %arg4: memref<4x4x128xf32, #tpu.memory_space<vmem>>, %arg5: memref<4x4x128xf32, #tpu.memory_space<vmem>>, %arg6: memref<128x16xf32, #tpu.memory_space<vmem>>, %arg7: memref<2x4x16xf32, #tpu.memory_space<vmem>>, %arg8: memref<2x4x128xf32, #tpu.memory_space<vmem>>) attributes {dimension_semantics = [#tpu.dimension_semantics<parallel>, #tpu.dimension_semantics<arbitrary>], iteration_bounds = array<i64: 1, 1>, scalar_prefetch = 0 : i64, scratch_operands = 1 : i64, tpu.core_type = #tpu.core_type<tc>, window_params = [{transform_indices = @transform_0, window_bounds = array<i64: 4, 2, 16>}, {pipeline_mode = #tpu.pipeline_mode<synchronous>, transform_indices = @transform_1, window_bounds = array<i64: 16, 128>}, {transform_indices = @transform_2, window_bounds = array<i64: 4, 4, 128>}, {transform_indices = @transform_3, window_bounds = array<i64: 4, 4, 128>}, {pipeline_mode = #tpu.pipeline_mode<synchronous>, transform_indices = @transform_4, window_bounds = array<i64: 128, 16>}, {transform_indices = @transform_5, window_bounds = array<i64: 2, 4, 16>}]} {
    %c0_i32 = arith.constant 0 : i32
    %0 = arith.cmpi eq, %arg1, %c0_i32 : i32
    %1 = arith.extui %0 : i1 to i32
    %c0_i32_0 = arith.constant 0 : i32
    %2 = arith.cmpi ne, %1, %c0_i32_0 : i32
    scf.if %2 {
      %cst_37 = arith.constant 0.000000e+00 : f32
      %89 = vector.broadcast %cst_37 : f32 to vector<2x4x128xf32>
      %c0_38 = arith.constant 0 : index
      %c0_39 = arith.constant 0 : index
      %c0_40 = arith.constant 0 : index
      %90 = vector.load %arg8[%c0_38, %c0_39, %c0_40] : memref<2x4x128xf32, #tpu.memory_space<vmem>>, vector<2x4x128xf32>
      tpu.vector_store %arg8[%c0_38, %c0_39, %c0_40], %89 {strides = array<i32>} : memref<2x4x128xf32, #tpu.memory_space<vmem>>, vector<2x4x128xf32>,
    } else {
    }
    %c0 = arith.constant 0 : index
    %c0_1 = arith.constant 0 : index
    %c0_2 = arith.constant 0 : index
    %3 = vector.load %arg2[%c0, %c0_1, %c0_2] : memref<4x2x16xf32, #tpu.memory_space<vmem>>, vector<4x2x16xf32>
    %4 = vector.shape_cast %3 : vector<4x2x16xf32> to vector<8x16xf32>
    %c0_3 = arith.constant 0 : index
    %c0_4 = arith.constant 0 : index
    %5 = vector.load %arg3[%c0_3, %c0_4] : memref<16x128xf32, #tpu.memory_space<vmem>>, vector<16x128xf32>
    %cst = arith.constant dense<0.000000e+00> : vector<8x128xf32>
    %6 = tpu.matmul %4, %5, %cst {dimension_numbers = #tpu.dot_dimension_numbers<[1], [0], [0], [1], [0, 0, 1, 1], [], []>} : vector<8x16xf32>, vector<16x128xf32>, vector<8x128xf32> -> vector<8x128xf32>
    %7 = vector.shape_cast %6 : vector<8x128xf32> to vector<4x2x128xf32>
    %c0_5 = arith.constant 0 : index
    %c0_6 = arith.constant 0 : index
    %c0_7 = arith.constant 0 : index
    %8 = vector.load %arg8[%c0_5, %c0_6, %c0_7] : memref<2x4x128xf32, #tpu.memory_space<vmem>>, vector<2x4x128xf32>
    %9 = vector.extract_strided_slice %7 {offsets = [0, 0, 0], sizes = [1, 2, 128], strides = [1, 1, 1]} : vector<4x2x128xf32> to vector<1x2x128xf32>
    %10 = vector.shape_cast %9 : vector<1x2x128xf32> to vector<2x128xf32>
    %c64_i32 = arith.constant 64 : i32
    %11 = tpu.dynamic_rotate %10 by %c64_i32 dim 1 : vector<2x128xf32>, i32 -> vector<2x128xf32>
    %12 = vector.shape_cast %10 : vector<2x128xf32> to vector<2x1x128xf32>
    %c0_8 = arith.constant 0 : index
    %c0_9 = arith.constant 0 : index
    %c0_10 = arith.constant 0 : index
    %13 = vector.load %arg4[%c0_8, %c0_9, %c0_10] : memref<4x4x128xf32, #tpu.memory_space<vmem>>, vector<1x4x128xf32>
    %14 = vector.shape_cast %13 : vector<1x4x128xf32> to vector<4x128xf32>
    %15 = vector.shape_cast %14 : vector<4x128xf32> to vector<1x4x128xf32>
    %16 = vector.broadcast %12 : vector<2x1x128xf32> to vector<2x4x128xf32>
    %17 = vector.broadcast %15 : vector<1x4x128xf32> to vector<2x4x128xf32>
    %18 = arith.mulf %16, %17 : vector<2x4x128xf32>
    %19 = vector.shape_cast %11 : vector<2x128xf32> to vector<2x1x128xf32>
    %c0_11 = arith.constant 0 : index
    %c0_12 = arith.constant 0 : index
    %c0_13 = arith.constant 0 : index
    %20 = vector.load %arg5[%c0_11, %c0_12, %c0_13] : memref<4x4x128xf32, #tpu.memory_space<vmem>>, vector<1x4x128xf32>
    %21 = vector.shape_cast %20 : vector<1x4x128xf32> to vector<4x128xf32>
    %22 = vector.shape_cast %21 : vector<4x128xf32> to vector<1x4x128xf32>
    %23 = vector.broadcast %19 : vector<2x1x128xf32> to vector<2x4x128xf32>
    %24 = vector.broadcast %22 : vector<1x4x128xf32> to vector<2x4x128xf32>
    %25 = arith.mulf %23, %24 : vector<2x4x128xf32>
    %26 = arith.addf %18, %25 : vector<2x4x128xf32>
    %27 = arith.addf %8, %26 : vector<2x4x128xf32>
    %28 = vector.extract_strided_slice %7 {offsets = [1, 0, 0], sizes = [1, 2, 128], strides = [1, 1, 1]} : vector<4x2x128xf32> to vector<1x2x128xf32>
    %29 = vector.shape_cast %28 : vector<1x2x128xf32> to vector<2x128xf32>
    %c64_i32_14 = arith.constant 64 : i32
    %30 = tpu.dynamic_rotate %29 by %c64_i32_14 dim 1 : vector<2x128xf32>, i32 -> vector<2x128xf32>
    %31 = vector.shape_cast %29 : vector<2x128xf32> to vector<2x1x128xf32>
    %c1 = arith.constant 1 : index
    %c0_15 = arith.constant 0 : index
    %c0_16 = arith.constant 0 : index
    %32 = vector.load %arg4[%c1, %c0_15, %c0_16] : memref<4x4x128xf32, #tpu.memory_space<vmem>>, vector<1x4x128xf32>
    %33 = vector.shape_cast %32 : vector<1x4x128xf32> to vector<4x128xf32>
    %34 = vector.shape_cast %33 : vector<4x128xf32> to vector<1x4x128xf32>
    %35 = vector.broadcast %31 : vector<2x1x128xf32> to vector<2x4x128xf32>
    %36 = vector.broadcast %34 : vector<1x4x128xf32> to vector<2x4x128xf32>
    %37 = arith.mulf %35, %36 : vector<2x4x128xf32>
    %38 = vector.shape_cast %30 : vector<2x128xf32> to vector<2x1x128xf32>
    %c1_17 = arith.constant 1 : index
    %c0_18 = arith.constant 0 : index
    %c0_19 = arith.constant 0 : index
    %39 = vector.load %arg5[%c1_17, %c0_18, %c0_19] : memref<4x4x128xf32, #tpu.memory_space<vmem>>, vector<1x4x128xf32>
    %40 = vector.shape_cast %39 : vector<1x4x128xf32> to vector<4x128xf32>
    %41 = vector.shape_cast %40 : vector<4x128xf32> to vector<1x4x128xf32>
    %42 = vector.broadcast %38 : vector<2x1x128xf32> to vector<2x4x128xf32>
    %43 = vector.broadcast %41 : vector<1x4x128xf32> to vector<2x4x128xf32>
    %44 = arith.mulf %42, %43 : vector<2x4x128xf32>
    %45 = arith.addf %37, %44 : vector<2x4x128xf32>
    %46 = arith.addf %27, %45 : vector<2x4x128xf32>
    %47 = vector.extract_strided_slice %7 {offsets = [2, 0, 0], sizes = [1, 2, 128], strides = [1, 1, 1]} : vector<4x2x128xf32> to vector<1x2x128xf32>
    %48 = vector.shape_cast %47 : vector<1x2x128xf32> to vector<2x128xf32>
    %c64_i32_20 = arith.constant 64 : i32
    %49 = tpu.dynamic_rotate %48 by %c64_i32_20 dim 1 : vector<2x128xf32>, i32 -> vector<2x128xf32>
    %50 = vector.shape_cast %48 : vector<2x128xf32> to vector<2x1x128xf32>
    %c2 = arith.constant 2 : index
    %c0_21 = arith.constant 0 : index
    %c0_22 = arith.constant 0 : index
    %51 = vector.load %arg4[%c2, %c0_21, %c0_22] : memref<4x4x128xf32, #tpu.memory_space<vmem>>, vector<1x4x128xf32>
    %52 = vector.shape_cast %51 : vector<1x4x128xf32> to vector<4x128xf32>
    %53 = vector.shape_cast %52 : vector<4x128xf32> to vector<1x4x128xf32>
    %54 = vector.broadcast %50 : vector<2x1x128xf32> to vector<2x4x128xf32>
    %55 = vector.broadcast %53 : vector<1x4x128xf32> to vector<2x4x128xf32>
    %56 = arith.mulf %54, %55 : vector<2x4x128xf32>
    %57 = vector.shape_cast %49 : vector<2x128xf32> to vector<2x1x128xf32>
    %c2_23 = arith.constant 2 : index
    %c0_24 = arith.constant 0 : index
    %c0_25 = arith.constant 0 : index
    %58 = vector.load %arg5[%c2_23, %c0_24, %c0_25] : memref<4x4x128xf32, #tpu.memory_space<vmem>>, vector<1x4x128xf32>
    %59 = vector.shape_cast %58 : vector<1x4x128xf32> to vector<4x128xf32>
    %60 = vector.shape_cast %59 : vector<4x128xf32> to vector<1x4x128xf32>
    %61 = vector.broadcast %57 : vector<2x1x128xf32> to vector<2x4x128xf32>
    %62 = vector.broadcast %60 : vector<1x4x128xf32> to vector<2x4x128xf32>
    %63 = arith.mulf %61, %62 : vector<2x4x128xf32>
    %64 = arith.addf %56, %63 : vector<2x4x128xf32>
    %65 = arith.addf %46, %64 : vector<2x4x128xf32>
    %66 = vector.extract_strided_slice %7 {offsets = [3, 0, 0], sizes = [1, 2, 128], strides = [1, 1, 1]} : vector<4x2x128xf32> to vector<1x2x128xf32>
    %67 = vector.shape_cast %66 : vector<1x2x128xf32> to vector<2x128xf32>
    %c64_i32_26 = arith.constant 64 : i32
    %68 = tpu.dynamic_rotate %67 by %c64_i32_26 dim 1 : vector<2x128xf32>, i32 -> vector<2x128xf32>
    %69 = vector.shape_cast %67 : vector<2x128xf32> to vector<2x1x128xf32>
    %c3 = arith.constant 3 : index
    %c0_27 = arith.constant 0 : index
    %c0_28 = arith.constant 0 : index
    %70 = vector.load %arg4[%c3, %c0_27, %c0_28] : memref<4x4x128xf32, #tpu.memory_space<vmem>>, vector<1x4x128xf32>
    %71 = vector.shape_cast %70 : vector<1x4x128xf32> to vector<4x128xf32>
    %72 = vector.shape_cast %71 : vector<4x128xf32> to vector<1x4x128xf32>
    %73 = vector.broadcast %69 : vector<2x1x128xf32> to vector<2x4x128xf32>
    %74 = vector.broadcast %72 : vector<1x4x128xf32> to vector<2x4x128xf32>
    %75 = arith.mulf %73, %74 : vector<2x4x128xf32>
    %76 = vector.shape_cast %68 : vector<2x128xf32> to vector<2x1x128xf32>
    %c3_29 = arith.constant 3 : index
    %c0_30 = arith.constant 0 : index
    %c0_31 = arith.constant 0 : index
    %77 = vector.load %arg5[%c3_29, %c0_30, %c0_31] : memref<4x4x128xf32, #tpu.memory_space<vmem>>, vector<1x4x128xf32>
    %78 = vector.shape_cast %77 : vector<1x4x128xf32> to vector<4x128xf32>
    %79 = vector.shape_cast %78 : vector<4x128xf32> to vector<1x4x128xf32>
    %80 = vector.broadcast %76 : vector<2x1x128xf32> to vector<2x4x128xf32>
    %81 = vector.broadcast %79 : vector<1x4x128xf32> to vector<2x4x128xf32>
    %82 = arith.mulf %80, %81 : vector<2x4x128xf32>
    %83 = arith.addf %75, %82 : vector<2x4x128xf32>
    %84 = arith.addf %65, %83 : vector<2x4x128xf32>
    %c0_32 = arith.constant 0 : index
    %c0_33 = arith.constant 0 : index
    %c0_34 = arith.constant 0 : index
    %85 = vector.load %arg8[%c0_32, %c0_33, %c0_34] : memref<2x4x128xf32, #tpu.memory_space<vmem>>, vector<2x4x128xf32>
    tpu.vector_store %arg8[%c0_32, %c0_33, %c0_34], %84 {strides = array<i32>} : memref<2x4x128xf32, #tpu.memory_space<vmem>>, vector<2x4x128xf32>,
    %c0_i32_35 = arith.constant 0 : i32
    %86 = arith.cmpi eq, %arg1, %c0_i32_35 : i32
    %87 = arith.extui %86 : i1 to i32
    %c0_i32_36 = arith.constant 0 : i32
    %88 = arith.cmpi ne, %87, %c0_i32_36 : i32
    scf.if %88 {
      %c0_37 = arith.constant 0 : index
      %c0_38 = arith.constant 0 : index
      %c0_39 = arith.constant 0 : index
      %89 = vector.load %arg8[%c0_37, %c0_38, %c0_39] : memref<2x4x128xf32, #tpu.memory_space<vmem>>, vector<2x4x128xf32>
      %90 = vector.shape_cast %89 : vector<2x4x128xf32> to vector<8x128xf32>
      %c0_40 = arith.constant 0 : index
      %c0_41 = arith.constant 0 : index
      %91 = vector.load %arg6[%c0_40, %c0_41] : memref<128x16xf32, #tpu.memory_space<vmem>>, vector<128x16xf32>
      %cst_42 = arith.constant dense<0.000000e+00> : vector<8x16xf32>
      %92 = tpu.matmul %90, %91, %cst_42 {dimension_numbers = #tpu.dot_dimension_numbers<[1], [0], [0], [1], [0, 0, 1, 1], [], []>} : vector<8x128xf32>, vector<128x16xf32>, vector<8x16xf32> -> vector<8x16xf32>
      %93 = vector.shape_cast %92 : vector<8x16xf32> to vector<2x4x16xf32>
      %c0_43 = arith.constant 0 : index
      %c0_44 = arith.constant 0 : index
      %c0_45 = arith.constant 0 : index
      %94 = vector.load %arg7[%c0_43, %c0_44, %c0_45] : memref<2x4x16xf32, #tpu.memory_space<vmem>>, vector<2x4x16xf32>
      tpu.vector_store %arg7[%c0_43, %c0_44, %c0_45], %93 {strides = array<i32>} : memref<2x4x16xf32, #tpu.memory_space<vmem>>, vector<2x4x16xf32>,
    } else {
    }
    return
  }
  func.func @transform_0(%arg0: i32, %arg1: i32) -> (i32, i32, i32) {
    %c0_i32 = arith.constant 0 : i32
    %c0_i32_0 = arith.constant 0 : i32
    return %arg1, %arg0, %c0_i32 : i32, i32, i32
  }
  func.func @transform_1(%arg0: i32, %arg1: i32) -> (i32, i32) {
    %c0_i32 = arith.constant 0 : i32
    %c0_i32_0 = arith.constant 0 : i32
    %c0_i32_1 = arith.constant 0 : i32
    return %c0_i32, %c0_i32_0 : i32, i32
  }
  func.func @transform_2(%arg0: i32, %arg1: i32) -> (i32, i32, i32) {
    %c0_i32 = arith.constant 0 : i32
    %c0_i32_0 = arith.constant 0 : i32
    %c0_i32_1 = arith.constant 0 : i32
    return %arg1, %c0_i32, %c0_i32_0 : i32, i32, i32
  }
  func.func @transform_3(%arg0: i32, %arg1: i32) -> (i32, i32, i32) {
    %c0_i32 = arith.constant 0 : i32
    %c0_i32_0 = arith.constant 0 : i32
    %c0_i32_1 = arith.constant 0 : i32
    return %arg1, %c0_i32, %c0_i32_0 : i32, i32, i32
  }
  func.func @transform_4(%arg0: i32, %arg1: i32) -> (i32, i32) {
    %c0_i32 = arith.constant 0 : i32
    %c0_i32_0 = arith.constant 0 : i32
    %c0_i32_1 = arith.constant 0 : i32
    return %c0_i32, %c0_i32_0 : i32, i32
  }
  func.func @transform_5(%arg0: i32, %arg1: i32) -> (i32, i32, i32) {
    %c0_i32 = arith.constant 0 : i32
    %c0_i32_0 = arith.constant 0 : i32
    %c0_i32_1 = arith.constant 0 : i32
    return %arg0, %c0_i32, %c0_i32_0 : i32, i32, i32
  }
}

</mosaic_0001>

<bundles_post_ra>
// kernel: spectral_conv1d.1
= control target key start
LH: loop header
LB: loop body
LE: loop exit
PB: predicated region body
PF: predicated region fallthrough
CT: control target
= control target key end

     0   :  { %v42_v2 = vlaneseq  ;;  %v657_v3 = vmov 0.0|0.0   ;;  %v658_v5 = vmov 0.0   ;;  %vm659_vm0 = vmmov 0   ;;  %s862_s0 = inlined_call_operand.vmem [shape: f32[4,2,16], index: 0, kind: input, shape index: {}]   ;;  %s863_s1 = inlined_call_operand.vmem [shape: f32[16,128], index: 1, kind: input, shape index: {}]   ;;  %s864_s2 = inlined_call_operand.vmem [shape: f32[4,4,128], index: 2, kind: input, shape index: {}]   ;;  %s865_s3 = inlined_call_operand.vmem [shape: f32[4,4,128], index: 3, kind: input, shape index: {}]   ;;  %s866_s4 = inlined_call_operand.vmem [shape: f32[128,16], index: 4, kind: input, shape index: {}]   ;;  %s867_s5 = inlined_call_operand.hbm [shape: f32[2,4,16], index: 5, kind: output, shape index: {}]  }
   0x1   :  { %v31_v0 = vld [vmem:[%s863_s1] sm:$0xff]  ;;  %v32_v1 = vld [vmem:[%s863_s1 + $0x8] sm:$0xff]  ;;  %597 = vmatprep.subr.bf16.mxu0 %v657_v3  ;;  %25 = vst [vmem:[#allocation2] sm:$0xf] %v658_v5  ;;  %26 = vst [vmem:[#allocation2 + $0x4] sm:$0xf] %v658_v5  ;;  %559 = vmatprep.mubr.msk.f32.mxu0 %vm659_vm0, %v658_v5 }
   0x2   :  { %v598_v4 = vpack.c.bf16 %v32_v1, %v31_v0  ;;  %v27_v6 = vld [vmem:[%s862_s0] sm:$0x3]  ;;  %v28_v7 = vld [vmem:[%s862_s0 + $0x2] sm:$0x3]  ;;  %v29_v8 = vld [vmem:[%s862_s0 + $0x4] sm:$0x3]  ;;  %600 = vmatprep.subr.bf16.mxu1 %v657_v3  ;;  %594 = vmatprep.mubr.msk.f32.mxu1 %vm659_vm0, %v658_v5 }
   0x3   :  { %v30_v9 = vld [vmem:[%s862_s0 + $0x6] sm:$0x3]  ;;  %v660_v10 = vmov 1983009808   ;;  %v43_v12 = vshrl.u32 %v42_v2, 7 }
   0x4   :  { %599 = vmatpush3.bf16.msra.mxu0 %v598_v4  ;;  %v40_v11 = vunpack.c.l.s4 %v660_v10 }
   0x5   :  { %10 = vsyncpa [#allocation4], 0  ;;  %v37_v13 = vcombine.low %v27_v6, %v28_v7  ;;  %v38_v14 = vcombine.low %v29_v8, %v30_v9  ;;  %vm54_vm1 = vcmask 130048   ;;  %v416_v20 = vld [vmem:[%s866_s4] sm:$0xff]  ;;  %v417_v21 = vld [vmem:[%s866_s4 + $0x8] sm:$0xff]  ;;  %v744_v36 = vsub.s32 0, %v43_v12 }
   0x6   :  { %v41_v15 = vunpack.c.0.s8 %v40_v11  ;;  %v601_v22 = vpack.c.bf16 %v417_v21, %v416_v20  ;;  %v661_v23 = vmov 1966171168   ;;  %v418_v25 = vld [vmem:[%s866_s4 + $0x10] sm:$0xff]  ;;  %v419_v26 = vld [vmem:[%s866_s4 + $0x18] sm:$0xff]  ;;  %v420_v29 = vld [vmem:[%s866_s4 + $0x20] sm:$0xff]  ;;  %s662_s19 = smov 64  }
   0x7   :  { %v154_v24 = vunpack.c.l.s4 %v661_v23  ;;  %v604_v27 = vpack.c.bf16 %v419_v26, %v418_v25  ;;  %v421_v30 = vld [vmem:[%s866_s4 + $0x28] sm:$0xff]  ;;  %v422_v34 = vld [vmem:[%s866_s4 + $0x30] sm:$0xff]  ;;  %v423_v35 = vld [vmem:[%s866_s4 + $0x38] sm:$0xff]  ;;  %vm509_vm2 = vcmask 125952  }
   0x8   :  { %v44_v16 = vsub.s32 %v41_v15, %v43_v12  ;;  %602 = vmatpush3.bf16.msra.mxu1 %v601_v22  ;;  %v607_v31 = vpack.c.bf16 %v421_v30, %v420_v29  ;;  %v610_v40 = vpack.c.bf16 %v423_v35, %v422_v34  ;;  %v424_v44 = vld [vmem:[%s866_s4 + $0x40] sm:$0xff]  ;;  %v425_v45 = vld [vmem:[%s866_s4 + $0x48] sm:$0xff]  ;;  %v426_v58 = vld [vmem:[%s866_s4 + $0x50] sm:$0xff] }
   0x9   :  { %603 = vmatprep.subr.bf16.mxu1 %v657_v3  ;;  %v155_v28 = vunpack.c.0.s8 %v154_v24  ;;  %v613_v51 = vpack.c.bf16 %v425_v45, %v424_v44  ;;  %v427_v59 = vld [vmem:[%s866_s4 + $0x58] sm:$0xff]  ;;  %v428_v2 = vld [vmem:[%s866_s4 + $0x60] sm:$0xff]  ;;  %v429_v4 = vld [vmem:[%s866_s4 + $0x68] sm:$0xff] }
   0xa   :  { %v45_v17 = vrot.slane %v37_v13, %v44_v16  ;;  %v52_v18 = vrot.slane %v38_v14, %v44_v16  ;;  %v616_v0 = vpack.c.bf16 %v427_v59, %v426_v58  ;;  %v619_v5 = vpack.c.bf16 %v429_v4, %v428_v2  ;;  %v430_v6 = vld [vmem:[%s866_s4 + $0x70] sm:$0xff]  ;;  %v431_v7 = vld [vmem:[%s866_s4 + $0x78] sm:$0xff]  ;;  %v531_v15 = vld [vmem:[%s864_s2 + $0x8] sm:$0xf] }
   0xb   :  { %v735_v32 = vsub.s32 %v155_v28, %v43_v12  ;;  %v622_v8 = vpack.c.bf16 %v431_v7, %v430_v6  ;;  %v161_v12 = vld [vmem:[%s864_s2] sm:$0xf]  ;;  %v532_v25 = vld [vmem:[%s865_s3 + $0x8] sm:$0xf]  ;;  %v533_v44 = vld [vmem:[%s864_s2 + $0xc] sm:$0xf] }
   0xc   :  { %v53_v19 = vcombine.low %v45_v17, %v52_v18  ;;  %605 = vmatpush3.bf16.msra.mxu1 %v604_v27  ;;  %v529_v18 = vld [vmem:[%s864_s2 + $0x4] sm:$0xf]  ;;  %v149_v45 = vld [vmem:[#allocation2] sm:$0xf]  ;;  %s663_s2 = smov [#allocation3]  }
   0xd   :  { %606 = vmatprep.subr.bf16.mxu1 %v657_v3 }
   0xe   :  { %560 = vmatmul.mubr.msk.f32.vlgmr.msra.gmra.mrb[0].mxu0 %vm54_vm1, %v53_v19 }
  0x10   :  { %608 = vmatpush3.bf16.msra.mxu1 %v607_v31 }
  0x11   :  { %609 = vmatprep.subr.bf16.mxu1 %v657_v3 }
  0x14   :  { %611 = vmatpush3.bf16.msra.mxu1 %v610_v40 }
  0x15   :  { %612 = vmatprep.subr.bf16.mxu1 %v657_v3 }
  0x18   :  { %614 = vmatpush3.bf16.msra.mxu1 %v613_v51 }
  0x19   :  { %615 = vmatprep.subr.bf16.mxu1 %v657_v3 }
  0x1c   :  { %617 = vmatpush3.bf16.msra.mxu1 %v616_v0 }
  0x1d   :  { %618 = vmatprep.subr.bf16.mxu1 %v657_v3 }
  0x20   :  { %620 = vmatpush3.bf16.msra.mxu1 %v619_v5 }
  0x21   :  { %621 = vmatprep.subr.bf16.mxu1 %v657_v3  ;;  %v197_v3 = vld [vmem:[%s865_s3] sm:$0xf] }
  0x24   :  { %623 = vmatpush3.bf16.msra.mxu1 %v622_v8 }
  0xe1   :  { %v123_v33 = vpop.f32.mrb[0].mxu0 }
  0xe2   :  { %v128_v37 = vcombine.high %v123_v33, %v123_v33  ;;  %v135_v38 = vrot.slane %v123_v33, %v44_v16  ;;  %v561_v39 = vpop.f32.mrb[1].mxu0 }
  0xe4   :  { %v142_v41 = vrot.slane %v128_v37, %v44_v16  ;;  %v159_v42 = vrot.slane %v135_v38, %v735_v32  ;;  %151 = vrot.lane.b32.xlu0 %v135_v38, %s662_s19  ;;  %v143_v43 = vcombine.high %v135_v38, %v135_v38 }
  0xe6   :  { %v160_v46 = vcombine.high %v159_v42, %v159_v42  ;;  %v165_v47 = vrot.slane %v159_v42, %v744_v36  ;;  %v287_v48 = vrot.slane %v142_v41, %v735_v32  ;;  %279 = vrot.lane.b32.xlu1 %v142_v41, %s662_s19  ;;  %v222_v49 = vrot.slane %v143_v43, %v735_v32 }
  0xe7   :  { %v144_v50 = vcombine.high %v142_v41, %v142_v41 }
  0xe8   :  { %v169_v52 = vrot.slane %v160_v46, %v744_v36  ;;  %v288_v53 = vcombine.high %v287_v48, %v287_v48  ;;  %v294_v54 = vrot.slane %v287_v48, %v744_v36  ;;  %214 = vrot.lane.b32.xlu0 %v143_v43, %s662_s19  ;;  %v223_v55 = vcombine.high %v222_v49, %v222_v49  ;;  %v530_v43 = vld [vmem:[%s865_s3 + $0x4] sm:$0xf] }
  0xe9   :  { %v229_v56 = vrot.slane %v222_v49, %v744_v36  ;;  %v764_v57 = vrot.slane %v144_v50, %v735_v32  ;;  %v172_v23 = vmul.f32 %v165_v47, %v161_v12 }
  0xea   :  { %v298_v60 = vrot.slane %v288_v53, %v744_v36  ;;  %344 = vrot.lane.b32.xlu1 %v144_v50, %s662_s19  ;;  %v776_v61 = vrot.slane %v223_v55, %v744_v36  ;;  %v173_v24 = vmul.f32 %v169_v52, %v161_v12  ;;  %v301_v26 = vmul.f32 %v531_v15, %v294_v54  ;;  %v534_v54 = vld [vmem:[%s865_s3 + $0xc] sm:$0xf]  ;;  %v150_v55 = vld [vmem:[#allocation2 + $0x4] sm:$0xf]  ;;  %s517_s3 = sshll.u32 %s663_s2, 4  ;;  %s518_s3 = int_to_ptr.vmem [resolvable:$true] %s517_s3 }
  0xeb   :  { %v353_v62 = vcombine.high %v764_v57, %v764_v57  ;;  %v359_v63 = vrot.slane %v764_v57, %v744_v36  ;;  %v236_v34 = vmul.f32 %v529_v18, %v229_v56  ;;  %s633_s25 = scalar_lea.vmem %s518_s3, 128  ;;  %p638_p1 = scmp.lt.s32.totalorder %s518_s3, %s518_s3 }
  0xec   :  { %v302_v51 = vmul.f32 %v531_v15, %v298_v60  ;;  %v237_v0 = vmul.f32 %v529_v18, %v776_v61  ;;  %p634_p0 = scmp.ne.s32.totalorder %s518_s3, %s633_s25  ;;  %p639_p2 = scmp.lt.s32.totalorder %s633_s25, %s633_s25 }
  0xed   :  { %v783_v1 = vrot.slane %v353_v62, %v744_v36  ;;  %v366_v60 = vmul.f32 %v533_v44, %v359_v63 }
  0xee   :  { %p640_p3 = por %p639_p2, %p638_p1 }
  0xf0   :  { %p641_p4 = pnand %p640_p3, %p634_p0 }
 0x156   :  { %v152_v9 = vpop.permute.xlu0 %151 }
 0x157   :  { %v181_v10 = vrot.slane %v152_v9, %v735_v32  ;;  %v367_v9 = vmul.f32 %v533_v44, %v783_v1 }
 0x158   :  { %v280_v11 = vpop.permute.xlu1 %279 }
 0x159   :  { %v182_v13 = vcombine.high %v181_v10, %v181_v10  ;;  %v189_v14 = vrot.slane %v181_v10, %v735_v32  ;;  %v310_v16 = vrot.slane %v280_v11, %v735_v32 }
 0x15a   :  { %v215_v17 = vpop.permute.xlu0 %214 }
 0x15b   :  { %v196_v19 = vrot.slane %v182_v13, %v735_v32  ;;  %v201_v20 = vrot.slane %v189_v14, %v744_v36  ;;  %v311_v21 = vcombine.high %v310_v16, %v310_v16  ;;  %v318_v22 = vrot.slane %v310_v16, %v735_v32 }
 0x15c   :  { %v245_v27 = vrot.slane %v215_v17, %v735_v32  ;;  %v345_v28 = vpop.permute.xlu1 %344 }
 0x15d   :  { %v205_v29 = vrot.slane %v196_v19, %v744_v36  ;;  %v208_v30 = vmul.f32 %v201_v20, %v197_v3  ;;  %v325_v31 = vrot.slane %v311_v21, %v735_v32  ;;  %v331_v33 = vrot.slane %v318_v22, %v744_v36 }
 0x15e   :  { %v246_v35 = vcombine.high %v245_v27, %v245_v27  ;;  %v253_v37 = vrot.slane %v245_v27, %v735_v32  ;;  %v375_v38 = vrot.slane %v345_v28, %v735_v32 }
 0x15f   :  { %v209_v39 = vmul.f32 %v205_v29, %v197_v3  ;;  %v210_v40 = vadd.f32 %v208_v30, %v172_v23  ;;  %v335_v41 = vrot.slane %v325_v31, %v744_v36  ;;  %v338_v42 = vmul.f32 %v532_v25, %v331_v33 }
 0x160   :  { %v260_v46 = vrot.slane %v246_v35, %v735_v32  ;;  %v266_v47 = vrot.slane %v253_v37, %v744_v36  ;;  %v376_v48 = vcombine.high %v375_v38, %v375_v38  ;;  %v383_v49 = vrot.slane %v375_v38, %v735_v32 }
 0x161   :  { %v211_v50 = vadd.f32 %v209_v39, %v173_v24  ;;  %v339_v52 = vmul.f32 %v532_v25, %v335_v41  ;;  %v340_v53 = vadd.f32 %v338_v42, %v301_v26  ;;  %v212_v2 = vadd.f32 %v210_v40, %v149_v45 }
 0x162   :  { %v270_v56 = vrot.slane %v260_v46, %v744_v36  ;;  %v273_v58 = vmul.f32 %v530_v43, %v266_v47  ;;  %v390_v59 = vrot.slane %v376_v48, %v735_v32  ;;  %v396_v62 = vrot.slane %v383_v49, %v744_v36 }
 0x163   :  { %v341_v4 = vadd.f32 %v339_v52, %v302_v51  ;;  %v213_v10 = vadd.f32 %v211_v50, %v150_v55 }
 0x164   :  { %v274_v5 = vmul.f32 %v530_v43, %v270_v56  ;;  %v275_v6 = vadd.f32 %v273_v58, %v236_v34  ;;  %v400_v7 = vrot.slane %v390_v59, %v744_v36  ;;  %v403_v8 = vmul.f32 %v534_v54, %v396_v62 }
 0x166   :  { %v276_v11 = vadd.f32 %v274_v5, %v237_v0  ;;  %v277_v32 = vadd.f32 %v275_v6, %v212_v2  ;;  %v404_v12 = vmul.f32 %v534_v54, %v400_v7  ;;  %v405_v13 = vadd.f32 %v403_v8, %v366_v60 }
 0x168   :  { %v278_v14 = vadd.f32 %v276_v11, %v213_v10  ;;  %v342_v61 = vadd.f32 %v340_v53, %v277_v32  ;;  %v406_v15 = vadd.f32 %v404_v12, %v367_v9 }
 0x16a   :  { %v343_v16 = vadd.f32 %v341_v4, %v278_v14  ;;  %v407_v57 = vadd.f32 %v405_v13, %v342_v61 }
 0x16c   :  { %v408_v63 = vadd.f32 %v406_v15, %v343_v16  ;;  %409 = vst [vmem:[#allocation2] sm:$0xf] %v407_v57 }
 0x16e   :  { %410 = vst [vmem:[#allocation2 + $0x4] sm:$0xf] %v408_v63 }
 0x175   :  { %v632_v3 = vld [vmem:[#allocation2] sm:$0xff]  }
 0x176   :  { %595 = vmatmul.mubr.f32.vlgmr.msra.gmra.mrb[0].mxu1 %v632_v3 }
 0x249   :  { %v502_v36 = vpop.f32.mrb[0].mxu1 }
 0x24a   :  { %v507_v1 = vcombine.high %v502_v36, %v502_v36  ;;  %510 = vst.msk [vmem:[#allocation3] sm:$0xf] %vm509_vm2, %v502_v36  ;;  %v596_v17 = vpop.f32.mrb[1].mxu1 }
 0x24c   :  { %511 = vst.msk [vmem:[#allocation3 + $0x4] sm:$0xf] %vm509_vm2, %v507_v1 }
 0x24d   :  { %644 = shalt.err (!%p641_p4)
}
 0x24e   :  { %s645_s27 = scalar_lea.hbm %s867_s5, 128 }
 0x24f   :  { %p646_p5 = scmp.ne.s32.totalorder %s867_s5, %s645_s27  ;;  %p649_p6 = scmp.lt.u32.totalorder %s645_s27, %s867_s5 }
 0x251   :  { %p651_p7 = pnand %p649_p6, %p646_p5 }
 0x253   :  { %654 = shalt.err (!%p651_p7)
}
 0x254   :  { %s664_s6 = smov 4  }
 0x255   :  { %523 = dma.vmem_to_hbm [thread:$0]  %s518_s3, 128, %s867_s5, [#allocation4], %s662_s19, %s662_s19, %s664_s6  }
 0x256   :  { %655 = dma.done.wait [#allocation4], 128  }
 0x257   :  { %656 = vsyncadd [#allocation4], 4294967168 }
 0x258   :  { %527 = vsyncpa [#allocation4], 1 }

</bundles_post_ra>
